<compile_context>
chip_gen: v7x
topology: tpu7x:2x2x1
jax: 0.10.0
libtpu: 0.0.40
codegen_flags: <defaults>
</compile_context>

<pallas_src>
import jax
import jax.numpy as jnp
from jax.experimental import pallas as pl
from jax.experimental.pallas import tpu as pltpu

INIT_W = 0.003
MIN_HIDDEN = 512          # name kept from the PyTorch source (spec uses min())
LANE = 128
SUBLANE = 8
MAX_TB = 1024             # rows per grid step; ~a few MiB of VMEM, far below limits
SPLIT_B = 256             # batches >= this get >= 2 grid steps (both v7x TCs busy)


def _cdiv(a, b):
    return (a + b - 1) // b


def _round_up(x, m):
    return _cdiv(x, m) * m


def gn_kernel(s_ref, a_ref, w1s_ref, w1a_ref, b1_ref,
              w2_ref, b2_ref, w3_ref, b3_ref, o_ref):
    # Fused concat: [state, actions] @ W1 == state @ W1_s + actions @ W1_a.
    # Matmul operands are bf16 (single-pass MXU); accumulation, bias and ReLU
    # are f32 (important on v5e which has no bf16 VPU).
    s16 = s_ref[...].astype(jnp.bfloat16)
    a16 = a_ref[...].astype(jnp.bfloat16)
    h1 = (jnp.dot(s16, w1s_ref[...], preferred_element_type=jnp.float32)
          + jnp.dot(a16, w1a_ref[...], preferred_element_type=jnp.float32)
          + b1_ref[...])
    h1 = jnp.maximum(h1, 0.0).astype(jnp.bfloat16)
    h2 = jnp.dot(h1, w2_ref[...], preferred_element_type=jnp.float32) + b2_ref[...]
    h2 = jnp.maximum(h2, 0.0).astype(jnp.bfloat16)
    out = jnp.dot(h2, w3_ref[...], preferred_element_type=jnp.float32) + b3_ref[...]
    o_ref[...] = out.astype(o_ref.dtype)   # only the real output columns are written


def gn_forward(state, actions, kernel_params):
    """GN.forward: relu(L1(cat(s,a))) -> relu(L2) -> L3, batched over rows."""
    w1s, w1a, b1, w2, b2, w3, b3 = kernel_params
    B, S = state.shape
    A = actions.shape[1]
    H_pad = w2.shape[0]
    OUT = w3.shape[1]        # true output feature width (== state_size)

    # Batch tiling: minimize padding and step count; force >= 2 steps when the
    # batch is large enough so the "parallel" axis uses both v7x TensorCores.
    n_steps = max(_cdiv(B, MAX_TB), 2 if B >= SPLIT_B else 1)
    TB = _round_up(_cdiv(B, n_steps), SUBLANE)
    B_pad = n_steps * TB
    if B_pad != B:
        pad = ((0, B_pad - B), (0, 0))
        state = jnp.pad(state, pad)
        actions = jnp.pad(actions, pad)

    row_spec = lambda shape: pl.BlockSpec(shape, lambda i: (i, 0))     # tiled over batch
    # Constant-index params: single buffer, stay VMEM-resident across steps.
    res_spec = lambda shape: pl.BlockSpec(shape, lambda i: (0, 0),
                                          pipeline_mode=pl.Buffered(1))

    flops = 2 * B_pad * ((S + A) * H_pad + H_pad * H_pad + H_pad * OUT)
    bytes_accessed = (4 * B_pad * (S + A + OUT)                             # f32 activations in/out
                      + 2 * ((S + A) * H_pad + H_pad * H_pad + H_pad * OUT)  # bf16 weights, once
                      + 4 * (2 * H_pad + OUT))                               # f32 biases, once

    out_padded = pl.pallas_call(
        gn_kernel,
        out_shape=jax.ShapeDtypeStruct((B_pad, OUT), jnp.float32),
        grid=(n_steps,),
        in_specs=[
            row_spec((TB, S)), row_spec((TB, A)),
            res_spec(w1s.shape), res_spec(w1a.shape), res_spec(b1.shape),
            res_spec(w2.shape), res_spec(b2.shape),
            res_spec(w3.shape), res_spec(b3.shape),
        ],
        out_specs=row_spec((TB, OUT)),
        compiler_params=pltpu.CompilerParams(dimension_semantics=("parallel",)),
        cost_estimate=pl.CostEstimate(
            flops=flops, transcendentals=0, bytes_accessed=bytes_accessed),
    )(state, actions, w1s, w1a, b1, w2, b2, w3, b3)

    # Only the batch padding (if any) needs stripping; columns are already exact.
    return out_padded if B_pad == B else out_padded[:B]


def init_gn_params(key, state_size, num_actions):
    # Matches the PyTorch module exactly: hidden = min(512, int(state_size*1.5)).
    # (The constant's name suggests a floor, but the spec really uses min().)
    hidden = min(MIN_HIDDEN, int(state_size * 1.5))
    in_dim = state_size + num_actions
    H_pad = _round_up(hidden, LANE)

    ks = jax.random.split(key, 6)
    u = lambda k, shape: jax.random.uniform(
        k, shape, dtype=jnp.float32, minval=-INIT_W, maxval=INIT_W)

    # Logical f32 params, stored [in, out] (transposed vs torch) — define the math.
    w1 = u(ks[0], (in_dim, hidden))
    b1 = u(ks[1], (1, hidden))
    w2 = u(ks[2], (hidden, hidden))
    b2 = u(ks[3], (1, hidden))
    w3 = u(ks[4], (hidden, state_size))
    b3 = u(ks[5], (1, state_size))
    logical = (w1, b1, w2, b2, w3, b3)

    # Kernel-layout params: W1 split for the fused concat; hidden dim zero-padded
    # to the 128-lane width (inert: padded hidden units are relu(0)=0 and hit zero
    # rows downstream); weights in bf16, biases in f32; output dim kept at
    # state_size so the kernel stores only useful columns.
    pad2 = lambda a, r, c: jnp.pad(a, ((0, r - a.shape[0]), (0, c - a.shape[1])))
    w1s = pad2(w1[:state_size], state_size, H_pad).astype(jnp.bfloat16)
    w1a = pad2(w1[state_size:], num_actions, H_pad).astype(jnp.bfloat16)
    b1p = pad2(b1, 1, H_pad)
    w2p = pad2(w2, H_pad, H_pad).astype(jnp.bfloat16)
    b2p = pad2(b2, 1, H_pad)
    w3p = pad2(w3, H_pad, state_size).astype(jnp.bfloat16)
    b3p = b3
    kernel_params = (w1s, w1a, b1p, w2p, b2p, w3p, b3p)
    return kernel_params, logical


if __name__ == "__main__":
    state_size = 32
    num_actions = 8
    batch = 8

    key = jax.random.PRNGKey(0)
    k_p, k_s, k_a = jax.random.split(key, 3)

    kernel_params, logical_params = init_gn_params(k_p, state_size, num_actions)
    state = jax.random.normal(k_s, (batch, state_size), dtype=jnp.float32)
    actions = jax.random.normal(k_a, (batch, num_actions), dtype=jnp.float32)

    out = gn_forward(state, actions, kernel_params)
    jax.block_until_ready(out)

    # Pure-JAX f32 reference (unpadded logical params).
    w1, b1, w2, b2, w3, b3 = logical_params
    x = jnp.concatenate([state, actions], axis=1)
    ref = jnp.maximum(x @ w1 + b1, 0.0)
    ref = jnp.maximum(ref @ w2 + b2, 0.0)
    ref = ref @ w3 + b3

    assert out.shape == (batch, state_size)
    # bf16 matmul operands (f32 accumulation) vs f32 reference -> relaxed tolerance.
    assert jnp.allclose(out, ref, atol=1e-3, rtol=1e-2)

    print("KERNEL_OK")
</pallas_src>

<mosaic_0001>
module attributes {stable_mosaic.version = 11 : i64} {
  func.func @gn_kernel(%arg0: i32, %arg1: memref<8x32xf32, #tpu.memory_space<vmem>>, %arg2: memref<8x8xf32, #tpu.memory_space<vmem>>, %arg3: memref<32x128xbf16, #tpu.memory_space<vmem>>, %arg4: memref<8x128xbf16, #tpu.memory_space<vmem>>, %arg5: memref<1x128xf32, #tpu.memory_space<vmem>>, %arg6: memref<128x128xbf16, #tpu.memory_space<vmem>>, %arg7: memref<1x128xf32, #tpu.memory_space<vmem>>, %arg8: memref<128x32xbf16, #tpu.memory_space<vmem>>, %arg9: memref<1x32xf32, #tpu.memory_space<vmem>>, %arg10: memref<8x32xf32, #tpu.memory_space<vmem>>) attributes {dimension_semantics = [#tpu.dimension_semantics<parallel>], iteration_bounds = array<i64: 1>, scalar_prefetch = 0 : i64, scratch_operands = 0 : i64, tpu.core_type = #tpu.core_type<tc>, window_params = [{transform_indices = @transform_0, window_bounds = array<i64: 8, 32>}, {transform_indices = @transform_1, window_bounds = array<i64: 8, 8>}, {pipeline_mode = #tpu.pipeline_mode<synchronous>, transform_indices = @transform_2, window_bounds = array<i64: 32, 128>}, {pipeline_mode = #tpu.pipeline_mode<synchronous>, transform_indices = @transform_3, window_bounds = array<i64: 8, 128>}, {pipeline_mode = #tpu.pipeline_mode<synchronous>, transform_indices = @transform_4, window_bounds = array<i64: 1, 128>}, {pipeline_mode = #tpu.pipeline_mode<synchronous>, transform_indices = @transform_5, window_bounds = array<i64: 128, 128>}, {pipeline_mode = #tpu.pipeline_mode<synchronous>, transform_indices = @transform_6, window_bounds = array<i64: 1, 128>}, {pipeline_mode = #tpu.pipeline_mode<synchronous>, transform_indices = @transform_7, window_bounds = array<i64: 128, 32>}, {pipeline_mode = #tpu.pipeline_mode<synchronous>, transform_indices = @transform_8, window_bounds = array<i64: 1, 32>}, {transform_indices = @transform_9, window_bounds = array<i64: 8, 32>}]} {
    %c0 = arith.constant 0 : index
    %c0_0 = arith.constant 0 : index
    %0 = vector.load %arg1[%c0, %c0_0] : memref<8x32xf32, #tpu.memory_space<vmem>>, vector<8x32xf32>
    %1 = arith.truncf %0 : vector<8x32xf32> to vector<8x32xbf16>
    %c0_1 = arith.constant 0 : index
    %c0_2 = arith.constant 0 : index
    %2 = vector.load %arg2[%c0_1, %c0_2] : memref<8x8xf32, #tpu.memory_space<vmem>>, vector<8x8xf32>
    %3 = arith.truncf %2 : vector<8x8xf32> to vector<8x8xbf16>
    %c0_3 = arith.constant 0 : index
    %c0_4 = arith.constant 0 : index
    %4 = vector.load %arg3[%c0_3, %c0_4] : memref<32x128xbf16, #tpu.memory_space<vmem>>, vector<32x128xbf16>
    %cst = arith.constant dense<0.000000e+00> : vector<8x128xf32>
    %5 = tpu.matmul %1, %4, %cst {dimension_numbers = #tpu.dot_dimension_numbers<[1], [0], [0], [1], [0, 0, 1, 1], [], []>} : vector<8x32xbf16>, vector<32x128xbf16>, vector<8x128xf32> -> vector<8x128xf32>
    %c0_5 = arith.constant 0 : index
    %c0_6 = arith.constant 0 : index
    %6 = vector.load %arg4[%c0_5, %c0_6] : memref<8x128xbf16, #tpu.memory_space<vmem>>, vector<8x128xbf16>
    %cst_7 = arith.constant dense<0.000000e+00> : vector<8x128xf32>
    %7 = tpu.matmul %3, %6, %cst_7 {dimension_numbers = #tpu.dot_dimension_numbers<[1], [0], [0], [1], [0, 0, 1, 1], [], []>} : vector<8x8xbf16>, vector<8x128xbf16>, vector<8x128xf32> -> vector<8x128xf32>
    %8 = arith.addf %5, %7 : vector<8x128xf32>
    %c0_8 = arith.constant 0 : index
    %c0_9 = arith.constant 0 : index
    %9 = vector.load %arg5[%c0_8, %c0_9] : memref<1x128xf32, #tpu.memory_space<vmem>>, vector<1x128xf32>
    %10 = vector.broadcast %9 : vector<1x128xf32> to vector<8x128xf32>
    %11 = arith.addf %8, %10 : vector<8x128xf32>
    %cst_10 = arith.constant 0.000000e+00 : f32
    %12 = vector.broadcast %cst_10 : f32 to vector<8x128xf32>
    %13 = arith.maximumf %11, %12 : vector<8x128xf32>
    %14 = arith.truncf %13 : vector<8x128xf32> to vector<8x128xbf16>
    %c0_11 = arith.constant 0 : index
    %c0_12 = arith.constant 0 : index
    %15 = vector.load %arg6[%c0_11, %c0_12] : memref<128x128xbf16, #tpu.memory_space<vmem>>, vector<128x128xbf16>
    %cst_13 = arith.constant dense<0.000000e+00> : vector<8x128xf32>
    %16 = tpu.matmul %14, %15, %cst_13 {dimension_numbers = #tpu.dot_dimension_numbers<[1], [0], [0], [1], [0, 0, 1, 1], [], []>} : vector<8x128xbf16>, vector<128x128xbf16>, vector<8x128xf32> -> vector<8x128xf32>
    %c0_14 = arith.constant 0 : index
    %c0_15 = arith.constant 0 : index
    %17 = vector.load %arg7[%c0_14, %c0_15] : memref<1x128xf32, #tpu.memory_space<vmem>>, vector<1x128xf32>
    %18 = vector.broadcast %17 : vector<1x128xf32> to vector<8x128xf32>
    %19 = arith.addf %16, %18 : vector<8x128xf32>
    %cst_16 = arith.constant 0.000000e+00 : f32
    %20 = vector.broadcast %cst_16 : f32 to vector<8x128xf32>
    %21 = arith.maximumf %19, %20 : vector<8x128xf32>
    %22 = arith.truncf %21 : vector<8x128xf32> to vector<8x128xbf16>
    %c0_17 = arith.constant 0 : index
    %c0_18 = arith.constant 0 : index
    %23 = vector.load %arg8[%c0_17, %c0_18] : memref<128x32xbf16, #tpu.memory_space<vmem>>, vector<128x32xbf16>
    %cst_19 = arith.constant dense<0.000000e+00> : vector<8x32xf32>
    %24 = tpu.matmul %22, %23, %cst_19 {dimension_numbers = #tpu.dot_dimension_numbers<[1], [0], [0], [1], [0, 0, 1, 1], [], []>} : vector<8x128xbf16>, vector<128x32xbf16>, vector<8x32xf32> -> vector<8x32xf32>
    %c0_20 = arith.constant 0 : index
    %c0_21 = arith.constant 0 : index
    %25 = vector.load %arg9[%c0_20, %c0_21] : memref<1x32xf32, #tpu.memory_space<vmem>>, vector<1x32xf32>
    %26 = vector.broadcast %25 : vector<1x32xf32> to vector<8x32xf32>
    %27 = arith.addf %24, %26 : vector<8x32xf32>
    %c0_22 = arith.constant 0 : index
    %c0_23 = arith.constant 0 : index
    %28 = vector.load %arg10[%c0_22, %c0_23] : memref<8x32xf32, #tpu.memory_space<vmem>>, vector<8x32xf32>
    tpu.vector_store %arg10[%c0_22, %c0_23], %27 {strides = array<i32>} : memref<8x32xf32, #tpu.memory_space<vmem>>, vector<8x32xf32>,
    return
  }
  func.func @transform_0(%arg0: i32) -> (i32, i32) {
    %c0_i32 = arith.constant 0 : i32
    %c0_i32_0 = arith.constant 0 : i32
    return %arg0, %c0_i32 : i32, i32
  }
  func.func @transform_1(%arg0: i32) -> (i32, i32) {
    %c0_i32 = arith.constant 0 : i32
    %c0_i32_0 = arith.constant 0 : i32
    return %arg0, %c0_i32 : i32, i32
  }
  func.func @transform_2(%arg0: i32) -> (i32, i32) {
    %c0_i32 = arith.constant 0 : i32
    %c0_i32_0 = arith.constant 0 : i32
    %c0_i32_1 = arith.constant 0 : i32
    return %c0_i32, %c0_i32_0 : i32, i32
  }
  func.func @transform_3(%arg0: i32) -> (i32, i32) {
    %c0_i32 = arith.constant 0 : i32
    %c0_i32_0 = arith.constant 0 : i32
    %c0_i32_1 = arith.constant 0 : i32
    return %c0_i32, %c0_i32_0 : i32, i32
  }
  func.func @transform_4(%arg0: i32) -> (i32, i32) {
    %c0_i32 = arith.constant 0 : i32
    %c0_i32_0 = arith.constant 0 : i32
    %c0_i32_1 = arith.constant 0 : i32
    return %c0_i32, %c0_i32_0 : i32, i32
  }
  func.func @transform_5(%arg0: i32) -> (i32, i32) {
    %c0_i32 = arith.constant 0 : i32
    %c0_i32_0 = arith.constant 0 : i32
    %c0_i32_1 = arith.constant 0 : i32
    return %c0_i32, %c0_i32_0 : i32, i32
  }
  func.func @transform_6(%arg0: i32) -> (i32, i32) {
    %c0_i32 = arith.constant 0 : i32
    %c0_i32_0 = arith.constant 0 : i32
    %c0_i32_1 = arith.constant 0 : i32
    return %c0_i32, %c0_i32_0 : i32, i32
  }
  func.func @transform_7(%arg0: i32) -> (i32, i32) {
    %c0_i32 = arith.constant 0 : i32
    %c0_i32_0 = arith.constant 0 : i32
    %c0_i32_1 = arith.constant 0 : i32
    return %c0_i32, %c0_i32_0 : i32, i32
  }
  func.func @transform_8(%arg0: i32) -> (i32, i32) {
    %c0_i32 = arith.constant 0 : i32
    %c0_i32_0 = arith.constant 0 : i32
    %c0_i32_1 = arith.constant 0 : i32
    return %c0_i32, %c0_i32_0 : i32, i32
  }
  func.func @transform_9(%arg0: i32) -> (i32, i32) {
    %c0_i32 = arith.constant 0 : i32
    %c0_i32_0 = arith.constant 0 : i32
    return %arg0, %c0_i32 : i32, i32
  }
}

</mosaic_0001>

<bundles_post_ra>
// kernel: tpu_custom_call.1
= control target key start
LH: loop header
LB: loop body
LE: loop exit
PB: predicated region body
PF: predicated region fallthrough
CT: control target
= control target key end

     0   :  { %14 = vsyncpa [#allocation3], 0  ;;  %s803_s0 = inlined_call_operand.vmem [shape: f32[8,32], index: 0, kind: input, shape index: {}]   ;;  %s804_s1 = inlined_call_operand.hbm [shape: f32[8,8], index: 1, kind: input, shape index: {}]   ;;  %s805_s2 = inlined_call_operand.vmem [shape: bf16[32,128], index: 2, kind: input, shape index: {}]   ;;  %s806_s3 = inlined_call_operand.hbm [shape: bf16[8,128], index: 3, kind: input, shape index: {}]   ;;  %s807_s4 = inlined_call_operand.vmem [shape: f32[1,128], index: 4, kind: input, shape index: {}]   ;;  %s808_s5 = inlined_call_operand.vmem [shape: bf16[128,128], index: 5, kind: input, shape index: {}]   ;;  %s809_s6 = inlined_call_operand.vmem [shape: f32[1,128], index: 6, kind: input, shape index: {}]   ;;  %s810_s7 = inlined_call_operand.vmem [shape: bf16[128,32], index: 7, kind: input, shape index: {}]   ;;  %s811_s8 = inlined_call_operand.vmem [shape: f32[1,32], index: 8, kind: input, shape index: {}]   ;;  %s812_s9 = inlined_call_operand.hbm [shape: f32[8,32], index: 9, kind: output, shape index: {}]  }
   0x1   :  { %15 = vsyncpa [#allocation6], 0 }
   0x2   :  { %16 = vsyncpa [#allocation4], 0  ;;  %s617_s30 = smov [#allocation2]   ;;  %s618_s11 = smov [#allocation5]  }
   0x3   :  { %s25_s10 = sshll.u32 %s617_s30, 4  ;;  %s37_s12 = sshll.u32 %s618_s11, 4  ;;  %s26_s10 = int_to_ptr.vmem [resolvable:$true] %s25_s10  ;;  %s38_s12 = int_to_ptr.vmem [resolvable:$true] %s37_s12 }
   0x4   :  { %s545_s15 = scalar_lea.hbm %s804_s1, 128 }
   0x5   :  { %p546_p0 = scmp.ne.s32.totalorder %s804_s1, %s545_s15  ;;  %p549_p1 = scmp.lt.u32.totalorder %s545_s15, %s804_s1 }
   0x7   :  { %p551_p2 = pnand %p549_p1, %p546_p0 }
   0x9   :  { %554 = shalt.err (!%p551_p2)
}
   0xa   :  { %s555_s20 = scalar_lea.vmem %s26_s10, 128  ;;  %p560_p4 = scmp.lt.s32.totalorder %s26_s10, %s26_s10 }
   0xb   :  { %p556_p3 = scmp.ne.s32.totalorder %s26_s10, %s555_s20  ;;  %p561_p5 = scmp.lt.s32.totalorder %s555_s20, %s555_s20 }
   0xd   :  { %p562_p6 = por %p561_p5, %p560_p4 }
   0xf   :  { %p563_p7 = pnand %p562_p6, %p556_p3 }
  0x11   :  { %566 = shalt.err (!%p563_p7)
}
  0x12   :  { %28 = dma.hbm_to_vmem [thread:$0]  %s804_s1, 128, %s26_s10, [#allocation3]  }
  0x13   :  { %s567_s25 = scalar_lea.hbm %s806_s3, 64 }
  0x14   :  { %p568_p8 = scmp.ne.s32.totalorder %s806_s3, %s567_s25  ;;  %p571_p9 = scmp.lt.u32.totalorder %s567_s25, %s806_s3 }
  0x16   :  { %p573_p10 = pnand %p571_p9, %p568_p8 }
  0x18   :  { %576 = shalt.err (!%p573_p10)
}
  0x19   :  { %s577_s30 = scalar_lea.vmem %s38_s12, 64  ;;  %p582_p12 = scmp.lt.s32.totalorder %s38_s12, %s38_s12 }
  0x1a   :  { %p578_p11 = scmp.ne.s32.totalorder %s38_s12, %s577_s30  ;;  %p583_p13 = scmp.lt.s32.totalorder %s577_s30, %s577_s30 }
  0x1c   :  { %p584_p0 = por %p583_p13, %p582_p12 }
  0x1e   :  { %p585_p1 = pnand %p584_p0, %p578_p11 }
  0x20   :  { %588 = shalt.err (!%p585_p1)
}
  0x21   :  { %40 = dma.hbm_to_vmem [thread:$0]  %s806_s3, 64, %s38_s12, [#allocation6]  }
  0x22   :  { %611 = dma.done.wait [#allocation3], 128  }
  0x23   :  { %612 = vsyncadd [#allocation3], 4294967168 }
  0x24   :  { %613 = dma.done.wait [#allocation6], 64  }
  0x25   :  { %614 = vsyncadd [#allocation6], 4294967232  ;;  %v619_v0 = vmov 0.0   ;;  %vm620_vm0 = vmmov 0   ;;  %vm71_vm1 = vcmask 1043456   ;;  %v527_v1 = vld [vmem:[%s805_s2] sm:$0xff]  }
  0x26   :  { %474 = vmatprep.subr.bf16.mxu1 %v619_v0  ;;  %468 = vmatprep.subr.bf16.mxu0 %v619_v0  ;;  %v66_v2 = vld [vmem:[#allocation5] sm:$0xf]  ;;  %v60_v3 = vld [vmem:[#allocation2] sm:$0xff]  ;;  %vm67_vm2 = vcmask 64512   ;;  %vm127_vm3 = vcmask 261120   ;;  %v531_v11 = vld [vmem:[%s808_s5 + $0x10] sm:$0xff]  }
  0x27   :  { %470 = vmatprep.mubr.msk.bf16.mxu0 %vm620_vm0, %v619_v0  ;;  %478 = vmatprep.mubr.msk.bf16.mxu1 %vm620_vm0, %v619_v0  ;;  %v73_v4 = vsel %vm71_vm1, %v66_v2, 0  ;;  %v61_v5 = vpack.c.bf16 %v60_v3, %v60_v3  ;;  %v528_v6 = vld [vmem:[%s805_s2 + $0x8] sm:$0xff]   ;;  %v58_v7 = vld [vmem:[%s803_s0] sm:$0xff]  ;;  %v532_v12 = vld [vmem:[%s808_s5 + $0x18] sm:$0xff]   ;;  %s621_s25 = smov [#allocation7]  }
  0x28   :  { %475 = vmatpush3.bf16.msra.mxu1 %v527_v1  ;;  %469 = vmatpush3.bf16.msra.mxu0 %v73_v4  ;;  %v529_v8 = vld [vmem:[%s808_s5] sm:$0xff]   ;;  %v59_v9 = vpack.c.bf16 %v58_v7, %v58_v7  ;;  %v530_v10 = vld [vmem:[%s808_s5 + $0x8] sm:$0xff]   ;;  %v535_v15 = vld [vmem:[%s808_s5 + $0x30] sm:$0xff]   ;;  %s412_s26 = sshll.u32 %s621_s25, 4  ;;  %s413_s26 = int_to_ptr.vmem [resolvable:$true] %s412_s26 }
  0x29   :  { %476 = vmatprep.subr.bf16.mxu1 %v619_v0  ;;  %482 = vmatprep.subr.bf16.mxu0 %v619_v0  ;;  %v533_v13 = vld [vmem:[%s808_s5 + $0x20] sm:$0xff]   ;;  %v534_v14 = vld [vmem:[%s808_s5 + $0x28] sm:$0xff]   ;;  %v536_v16 = vld [vmem:[%s808_s5 + $0x38] sm:$0xff]   ;;  %p594_p3 = scmp.lt.s32.totalorder %s413_s26, %s413_s26 }
  0x2a   :  { %v537_v17 = vld [vmem:[%s810_s7] sm:$0xff]   ;;  %v538_v18 = vld [vmem:[%s810_s7 + $0x8] sm:$0xff]   ;;  %v539_v19 = vld [vmem:[%s810_s7 + $0x10] sm:$0xff]  }
  0x2b   :  { %471 = vmatmul.mubr.msk.bf16.vlgmr.msra.gmra.mrb[0].mxu0 %vm67_vm2, %v61_v5  ;;  %v540_v20 = vld [vmem:[%s810_s7 + $0x18] sm:$0xff]   ;;  %v541_v21 = vld [vmem:[%s810_s7 + $0x20] sm:$0xff]   ;;  %v542_v22 = vld [vmem:[%s810_s7 + $0x28] sm:$0xff]  }
  0x2c   :  { %477 = vmatpush3.bf16.msra.mxu1 %v528_v6  ;;  %483 = vmatpush3.bf16.msra.mxu0 %v529_v8  ;;  %v426_v28 = vld [vmem:[%s807_s4] ss:$0 sm:$0xff]  ;;  %v543_v36 = vld [vmem:[%s810_s7 + $0x30] sm:$0xff]   ;;  %v544_v37 = vld [vmem:[%s810_s7 + $0x38] sm:$0xff]  }
  0x2d   :  { %498 = vmatprep.mubr.msk.bf16.mxu0 %vm620_vm0, %v619_v0  ;;  %484 = vmatprep.subr.bf16.mxu0 %v619_v0  ;;  %v427_v38 = vld [vmem:[%s809_s6] ss:$0 sm:$0xff]  ;;  %s589_s6 = scalar_lea.vmem %s413_s26, 128 }
  0x2e   :  { %502 = vmatprep.subr.bf16.mxu1 %v619_v0  ;;  %v436_v46 = vld [vmem:[%s811_s8] ss:$0 sm:$0xff]  ;;  %p590_p2 = scmp.ne.s32.totalorder %s413_s26, %s589_s6  ;;  %p595_p4 = scmp.lt.s32.totalorder %s589_s6, %s589_s6 }
  0x2f   :  { %479 = vmatmul.mubr.msk.bf16.vlgmr.msra.gmra.mrb[0].mxu1 %vm127_vm3, %v59_v9 }
  0x30   :  { %518 = vmatprep.mubr.msk.bf16.mxu1 %vm620_vm0, %v619_v0  ;;  %485 = vmatpush3.bf16.msra.mxu0 %v530_v10  ;;  %p596_p5 = por %p595_p4, %p594_p3 }
  0x31   :  { %486 = vmatprep.subr.bf16.mxu0 %v619_v0  ;;  %503 = vmatpush3.bf16.msra.mxu1 %v537_v17 }
  0x32   :  { %504 = vmatprep.subr.bf16.mxu1 %v619_v0  ;;  %p597_p6 = pnand %p596_p5, %p590_p2 }
  0x34   :  { %487 = vmatpush3.bf16.msra.mxu0 %v531_v11 }
  0x35   :  { %488 = vmatprep.subr.bf16.mxu0 %v619_v0  ;;  %505 = vmatpush3.bf16.msra.mxu1 %v538_v18 }
  0x36   :  { %506 = vmatprep.subr.bf16.mxu1 %v619_v0 }
  0x38   :  { %489 = vmatpush3.bf16.msra.mxu0 %v532_v12 }
  0x39   :  { %490 = vmatprep.subr.bf16.mxu0 %v619_v0  ;;  %507 = vmatpush3.bf16.msra.mxu1 %v539_v19 }
  0x3a   :  { %508 = vmatprep.subr.bf16.mxu1 %v619_v0 }
  0x3c   :  { %491 = vmatpush3.bf16.msra.mxu0 %v533_v13 }
  0x3d   :  { %492 = vmatprep.subr.bf16.mxu0 %v619_v0  ;;  %509 = vmatpush3.bf16.msra.mxu1 %v540_v20 }
  0x3e   :  { %510 = vmatprep.subr.bf16.mxu1 %v619_v0 }
  0x40   :  { %493 = vmatpush3.bf16.msra.mxu0 %v534_v14 }
  0x41   :  { %494 = vmatprep.subr.bf16.mxu0 %v619_v0  ;;  %511 = vmatpush3.bf16.msra.mxu1 %v541_v21 }
  0x42   :  { %512 = vmatprep.subr.bf16.mxu1 %v619_v0 }
  0x44   :  { %495 = vmatpush3.bf16.msra.mxu0 %v535_v15 }
  0x45   :  { %496 = vmatprep.subr.bf16.mxu0 %v619_v0  ;;  %513 = vmatpush3.bf16.msra.mxu1 %v542_v22 }
  0x46   :  { %514 = vmatprep.subr.bf16.mxu1 %v619_v0 }
  0x48   :  { %497 = vmatpush3.bf16.msra.mxu0 %v536_v16 }
  0x49   :  { %515 = vmatpush3.bf16.msra.mxu1 %v543_v36 }
  0x4a   :  { %516 = vmatprep.subr.bf16.mxu1 %v619_v0 }
  0x4d   :  { %517 = vmatpush3.bf16.msra.mxu1 %v544_v37 }
  0xfe   :  { %v109_v23 = vpop.f32.mrb[0].mxu0 }
  0xff   :  { %v472_v24 = vpop.f32.mrb[1].mxu0 }
 0x100   :  { %v112_v25 = vpop.f32.mrb[2].mxu0 }
 0x101   :  { %v473_v26 = vpop.f32.mrb[3].mxu0 }
 0x102   :  { %v165_v27 = vpop.f32.mrb[0].mxu1 }
 0x103   :  { %v166_v29 = vadd.f32 %v165_v27, %v109_v23  ;;  %v480_v30 = vpop.f32.mrb[1].mxu1 }
 0x104   :  { %v168_v31 = vpop.f32.mrb[2].mxu1 }
 0x105   :  { %v178_v32 = vadd.f32 %v426_v28, %v166_v29  ;;  %v481_v33 = vpop.f32.mrb[3].mxu1 }
 0x107   :  { %v179_v34 = vmax.f32 %v178_v32, 0.0 }
 0x109   :  { %v180_v35 = vpack.c.bf16 %v179_v34, %v179_v34 }
 0x10b   :  { %499 = vmatmul.mubr.bf16.vlgmr.msra.gmra.mrb[4].mxu0 %v180_v35 }
 0x1de   :  { %v286_v39 = vpop.f32.mrb[4].mxu0 }
 0x1df   :  { %v287_v40 = vadd.f32 %v427_v38, %v286_v39  ;;  %v500_v41 = vpop.f32.mrb[5].mxu0 }
 0x1e0   :  { %v289_v42 = vpop.f32.mrb[6].mxu0 }
 0x1e1   :  { %v292_v43 = vmax.f32 %v287_v40, 0.0  ;;  %v501_v44 = vpop.f32.mrb[7].mxu0 }
 0x1e3   :  { %v293_v45 = vpack.c.bf16 %v292_v43, %v292_v43 }
 0x1e5   :  { %519 = vmatmul.mubr.bf16.vlgmr.msra.gmra.mrb[4].mxu1 %v293_v45 }
 0x2b8   :  { %v399_v47 = vpop.f32.mrb[4].mxu1 }
 0x2b9   :  { %v400_v48 = vadd.f32 %v436_v46, %v399_v47  ;;  %v520_v49 = vpop.f32.mrb[5].mxu1 }
 0x2ba   :  { %v402_v50 = vpop.f32.mrb[6].mxu1 }
 0x2bb   :  { %405 = vst.msk [vmem:[#allocation7] sm:$0xff] %vm127_vm3, %v400_v48  ;;  %v521_v51 = vpop.f32.mrb[7].mxu1 }
 0x2bc   :  { %600 = shalt.err (!%p597_p6)
}
 0x2bd   :  { %s601_s8 = scalar_lea.hbm %s812_s9, 128 }
 0x2be   :  { %p602_p7 = scmp.ne.s32.totalorder %s812_s9, %s601_s8  ;;  %p605_p8 = scmp.lt.u32.totalorder %s601_s8, %s812_s9 }
 0x2c0   :  { %p607_p9 = pnand %p605_p8, %p602_p7 }
 0x2c2   :  { %610 = shalt.err (!%p607_p9)
}
 0x2c3   :  { %415 = dma.vmem_to_hbm [thread:$0]  %s413_s26, 128, %s812_s9, [#allocation4]  }
 0x2c4   :  { %615 = dma.done.wait [#allocation4], 128  }
 0x2c5   :  { %616 = vsyncadd [#allocation4], 4294967168 }
 0x2c6   :  { %419 = vsyncpa [#allocation3], 1 }
 0x2c7   :  { %420 = vsyncpa [#allocation6], 1 }
 0x2c8   :  { %421 = vsyncpa [#allocation4], 1 }

</bundles_post_ra>
